<compile_context>
chip_gen: v6e
topology: v6e:2x2x1
jax: 0.10.0
libtpu: 0.0.40
codegen_flags: <defaults>
</compile_context>

<pallas_src>
import numpy as np
import jax
import jax.numpy as jnp
from jax.experimental import pallas as pl
from jax.experimental.pallas import tpu as pltpu

EPS = 1e-5
MXU_DTYPE = jnp.bfloat16   # MXU operand dtype (f32 accumulate)

_OFFSETS = tuple((di, dj) for di in (-1, 0, 1) for dj in (-1, 0, 1))


# ----------------------------- pass 1: BN1 stats ------------------------------
def _stats_kernel(x_ref, s_ref):
    x = x_ref[...]                                             # (TP, C) f32
    s = jnp.concatenate([jnp.sum(x, axis=0, keepdims=True),
                         jnp.sum(x * x, axis=0, keepdims=True)], axis=0)
    s_ref[...] = s[None]                                       # (1, 2, C) per-tile partial


# ------------- pass 2: BN1 + ReLU + 1x1 conv + BN2 partial stats --------------
def _make_conv1_kernel(n_pix):
    inv_n = 1.0 / n_pix

    def kernel(x_ref, s1_ref, g1_ref, be1_ref, w1_ref, b1_ref, y_ref, s2_ref):
        x = x_ref[...]                                         # (TP, C) f32
        mu1 = s1_ref[0:1, :] * inv_n
        var1 = s1_ref[1:2, :] * inv_n - mu1 * mu1              # biased batch variance
        a1 = jax.lax.rsqrt(var1 + EPS) * g1_ref[...]           # fused BN scale
        c1 = be1_ref[...] - mu1 * a1                           # fused BN shift
        t = jnp.maximum(x * a1 + c1, 0.0)

        # 1x1 conv as one MXU matmul; weights pre-cast to bf16 in the wrapper.
        y = jnp.dot(t.astype(MXU_DTYPE), w1_ref[...],
                    preferred_element_type=jnp.float32) + b1_ref[...]

        # BN2 partial stats from the f32 value, then store y in bf16.
        s2 = jnp.concatenate([jnp.sum(y, axis=0, keepdims=True),
                              jnp.sum(y * y, axis=0, keepdims=True)], axis=0)
        s2_ref[...] = s2[None]                                 # (1, 2, Cm) per-tile partial
        y_ref[...] = y.astype(y_ref.dtype)                     # bf16 store

    return kernel


# ---------- pass 3: BN2 + ReLU + 3x3 conv (halo + 9 accumulating matmuls) -----
def _make_conv3_kernel(n_pix, tile_rows, H, W):
    inv_n = 1.0 / n_pix
    R = tile_rows // W                                         # image rows per tile

    def kernel(yb_ref, ym_ref, ya_ref, s2_ref, g2_ref, be2_ref, w3_ref, b3_ref,
               out_ref):
        mu2 = s2_ref[0:1, :] * inv_n
        var2 = s2_ref[1:2, :] * inv_n - mu2 * mu2
        a2 = jax.lax.rsqrt(var2 + EPS) * g2_ref[...]
        c2 = be2_ref[...] - mu2 * a2

        cm = ym_ref.shape[1]
        zrow = jnp.zeros((1, cm), ym_ref.dtype)
        # [ zero | prev tile's last image row | this tile | next tile's first image row | zero ]
        ypad = jnp.concatenate(
            [zrow, yb_ref[...], ym_ref[...], ya_ref[...], zrow], axis=0)
        h = jnp.maximum(ypad.astype(jnp.float32) * a2 + c2, 0.0)
        hb = h.astype(MXU_DTYPE)                               # (L, Cm) bf16 for the MXU

        # Boundary masks: 4 compares, computed once per tile, factored 3x3.
        p = jax.lax.broadcasted_iota(jnp.int32, (tile_rows, 1), 0)
        ii = (pl.program_id(0) * R + p // W) % H               # row within image
        jj = p % W                                             # col within image
        rmask = {-1: ii > 0, 0: None, 1: ii < H - 1}
        cmask = {-1: jj > 0, 0: None, 1: jj < W - 1}

        base = 1 + W                                           # first interior row of ypad
        # Center tap (always valid) initializes the accumulator with no mask.
        acc = jnp.dot(hb[base:base + tile_rows, :], w3_ref[4],
                      preferred_element_type=jnp.float32)
        for k, (di, dj) in enumerate(_OFFSETS):                # static 9-tap unroll
            if di == 0 and dj == 0:
                continue
            off = di * W + dj
            # Sublane-only shifted view of hb (always in-bounds thanks to the pad),
            # one small (Cm, Cout) matmul per tap; masked add of the (TP, Cout) result.
            contrib = jnp.dot(hb[base + off:base + off + tile_rows, :], w3_ref[k],
                              preferred_element_type=jnp.float32)
            masks = [m for m in (rmask[di], cmask[dj]) if m is not None]
            valid = masks[0] if len(masks) == 1 else masks[0] & masks[1]
            acc = acc + jnp.where(valid, contrib, 0.0)

        out_ref[...] = acc + b3_ref[...]                       # (TP, Cout) f32

    return kernel


# ---------------------------------- wrapper -----------------------------------
def _choose_tile_rows(n_pix, W, target):
    """Largest multiple of W that divides n_pix and is <= target (>= W)."""
    best = W
    m = W
    limit = min(n_pix, max(target, W))
    while m <= limit:
        if n_pix % m == 0:
            best = m
        m += W
    return best


def dense_basic_forward(x_nchw, params, *, tile_rows_target=2048):
    """Pallas implementation of DenseBasic.forward.  x_nchw: (N, C, H, W) f32."""
    g1, be1, w1_oihw, b1, g2, be2, w3_oihw, b3 = params
    N, C, H, W = x_nchw.shape
    Cm = w1_oihw.shape[0]          # 4 * growth_rate
    Cout = w3_oihw.shape[0]        # growth_rate
    P = N * H * W
    f32 = jnp.float32

    # TODO(synk): halo BlockSpec needs W to be a sublane multiple; pad W for
    # standard DenseNet widths (28/14/7) or switch to a different halo scheme.
    assert W % 8 == 0, "this kernel assumes image width is a multiple of 8"
    # bf16 blocks want a 16-row sublane tile; fall back to f32 y storage otherwise.
    y_dtype = jnp.bfloat16 if W % 16 == 0 else f32

    TP = _choose_tile_rows(P, W, tile_rows_target)   # pixel rows per tile
    n_tiles = P // TP
    R = TP // W                                      # image-row blocks per tile
    n_row_blocks = P // W
    HALO = W                                         # one image row of halo each side

    # NCHW -> (P, C) pixels-x-channels (wrapper-side layout plumbing).
    # TODO(synk): keep the surrounding network in NHWC/(P,C) layout so this
    # transpose and the output transpose/concat below disappear.
    x2 = jnp.transpose(x_nchw, (0, 2, 3, 1)).reshape(P, C).astype(f32)

    # Weights reshaped for this layout; MXU operands pre-cast to bf16.
    w1 = jnp.transpose(w1_oihw[:, :, 0, 0], (1, 0)).astype(MXU_DTYPE)          # (C, Cm)
    w3r = jnp.transpose(w3_oihw, (2, 3, 1, 0)).reshape(9, Cm, Cout).astype(MXU_DTYPE)

    g1r, be1r = g1.reshape(1, C).astype(f32), be1.reshape(1, C).astype(f32)
    b1r = b1.reshape(1, Cm).astype(f32)
    g2r, be2r = g2.reshape(1, Cm).astype(f32), be2.reshape(1, Cm).astype(f32)
    b3r = b3.reshape(1, Cout).astype(f32)

    vmem_cap = 48 * 1024 * 1024   # <= v7x's 64 MiB physical; ample on v5e/v6e (128 MiB)
    cp = pltpu.CompilerParams(dimension_semantics=("parallel",),
                              vmem_limit_bytes=vmem_cap)

    def _full(shape):
        return pl.BlockSpec(shape, lambda i: (0,) * len(shape))

    # ---- pass 1: per-tile partial BN1 stats (sum, sumsq), reduced below ----
    s1_parts = pl.pallas_call(
        _stats_kernel,
        grid=(n_tiles,),
        in_specs=[pl.BlockSpec((TP, C), lambda i: (i, 0))],
        out_specs=pl.BlockSpec((1, 2, C), lambda i: (i, 0, 0)),
        out_shape=jax.ShapeDtypeStruct((n_tiles, 2, C), f32),
        compiler_params=cp,
    )(x2)
    s1 = jnp.sum(s1_parts, axis=0)                   # (2, C)

    # ---- pass 2: BN1 + ReLU + 1x1 conv; bf16 y + per-tile BN2 partial stats ----
    y, s2_parts = pl.pallas_call(
        _make_conv1_kernel(P),
        grid=(n_tiles,),
        in_specs=[
            pl.BlockSpec((TP, C), lambda i: (i, 0)),   # x tile
            _full((2, C)),                             # BN1 raw stats
            _full((1, C)), _full((1, C)),              # gamma1 / beta1
            _full((C, Cm)), _full((1, Cm)),            # 1x1 weight (bf16) / bias
        ],
        out_specs=[
            pl.BlockSpec((TP, Cm), lambda i: (i, 0)),  # y tile (bf16)
            pl.BlockSpec((1, 2, Cm), lambda i: (i, 0, 0)),
        ],
        out_shape=[
            jax.ShapeDtypeStruct((P, Cm), y_dtype),
            jax.ShapeDtypeStruct((n_tiles, 2, Cm), f32),
        ],
        compiler_params=cp,
    )(x2, s1, g1r, be1r, w1, b1r)
    s2 = jnp.sum(s2_parts, axis=0)                   # (2, Cm)

    # ---- pass 3: BN2 + ReLU + 3x3 conv via halo tiles + 9 accumulating matmuls ----
    out_pc = pl.pallas_call(
        _make_conv3_kernel(P, TP, H, W),
        grid=(n_tiles,),
        in_specs=[
            # halo below: previous tile's last image row (clamped at the global start;
            # any tap reading garbage there is boundary-masked in-kernel)
            pl.BlockSpec((HALO, Cm), lambda i: (jnp.maximum(i * R - 1, 0), 0)),
            pl.BlockSpec((TP, Cm), lambda i: (i, 0)),
            # halo above: next tile's first image row (clamped at the global end)
            pl.BlockSpec((HALO, Cm),
                         lambda i: (jnp.minimum((i + 1) * R, n_row_blocks - 1), 0)),
            _full((2, Cm)),                            # BN2 raw stats
            _full((1, Cm)), _full((1, Cm)),            # gamma2 / beta2
            _full((9, Cm, Cout)), _full((1, Cout)),    # per-tap 3x3 weights (bf16) / bias
        ],
        out_specs=pl.BlockSpec((TP, Cout), lambda i: (i, 0)),
        out_shape=jax.ShapeDtypeStruct((P, Cout), f32),
        compiler_params=cp,
    )(y, y, y, s2, g2r, be2r, w3r, b3r)

    # Wrapper-side concat (layout plumbing): (P, Cout) -> NCHW growth channels, cat with x.
    conv_nchw = jnp.transpose(out_pc.reshape(N, H, W, Cout), (0, 3, 1, 2))
    return jnp.concatenate([x_nchw.astype(f32), conv_nchw], axis=1)


# ----------------------------- pure-JAX reference -----------------------------
def dense_basic_reference(x, params):
    """Mirrors the PyTorch module in training mode (batch-stat BN), NCHW, f32."""
    g1, be1, w1_oihw, b1, g2, be2, w3_oihw, b3 = params

    def bn_relu(v, g, b):
        mu = jnp.mean(v, axis=(0, 2, 3), keepdims=True)
        var = jnp.mean((v - mu) ** 2, axis=(0, 2, 3), keepdims=True)
        out = (v - mu) * jax.lax.rsqrt(var + EPS) * g.reshape(1, -1, 1, 1) \
              + b.reshape(1, -1, 1, 1)
        return jnp.maximum(out, 0.0)

    t = bn_relu(x, g1, be1)
    y = jax.lax.conv_general_dilated(
        t, w1_oihw, (1, 1), 'VALID',
        dimension_numbers=('NCHW', 'OIHW', 'NCHW')) + b1.reshape(1, -1, 1, 1)
    h = bn_relu(y, g2, be2)
    o = jax.lax.conv_general_dilated(
        h, w3_oihw, (1, 1), ((1, 1), (1, 1)),
        dimension_numbers=('NCHW', 'OIHW', 'NCHW')) + b3.reshape(1, -1, 1, 1)
    return jnp.concatenate([x, o], axis=1)


if __name__ == "__main__":
    N, C, H, W = 2, 4, 16, 16
    growth = 4
    Cm, Cout = 4 * growth, growth

    key = jax.random.PRNGKey(0)
    ks = jax.random.split(key, 9)
    x = jax.random.normal(ks[0], (N, C, H, W), jnp.float32)

    # deterministic synthetic parameters (shapes from DenseBasic.__init__)
    g1 = 1.0 + 0.1 * jax.random.normal(ks[1], (C,), jnp.float32)
    be1 = 0.1 * jax.random.normal(ks[2], (C,), jnp.float32)
    w1 = 0.3 * jax.random.normal(ks[3], (Cm, C, 1, 1), jnp.float32)
    b1 = 0.1 * jax.random.normal(ks[4], (Cm,), jnp.float32)
    g2 = 1.0 + 0.1 * jax.random.normal(ks[5], (Cm,), jnp.float32)
    be2 = 0.1 * jax.random.normal(ks[6], (Cm,), jnp.float32)
    w3 = 0.2 * jax.random.normal(ks[7], (Cout, Cm, 3, 3), jnp.float32)
    b3 = 0.1 * jax.random.normal(ks[8], (Cout,), jnp.float32)
    params = (g1, be1, w1, b1, g2, be2, w3, b3)

    # tile_rows_target=128 -> 4 grid steps, tiles split each 16x16 image so the
    # halo path (neighbor-tile rows + clamped boundary tiles) is exercised.
    out = jax.block_until_ready(dense_basic_forward(x, params, tile_rows_target=128))
    ref = jax.block_until_ready(dense_basic_reference(x, params))

    assert out.shape == (N, C + growth, H, W), out.shape
    # bf16 MXU operands + bf16 y storage -> loose tolerance.
    tol = 5e-2
    np.testing.assert_allclose(np.asarray(out), np.asarray(ref), rtol=tol, atol=tol)
    print("KERNEL_OK")
</pallas_src>

<mosaic_0001>
module attributes {stable_mosaic.version = 11 : i64} {
  func.func @_stats_kernel(%arg0: i32, %arg1: memref<128x4xf32, #tpu.memory_space<vmem>>, %arg2: memref<1x2x4xf32, #tpu.memory_space<vmem>>) attributes {dimension_semantics = [#tpu.dimension_semantics<parallel>], iteration_bounds = array<i64: 4>, scalar_prefetch = 0 : i64, scratch_operands = 0 : i64, tpu.core_type = #tpu.core_type<tc>, window_params = [{transform_indices = @transform_0, window_bounds = array<i64: 128, 4>}, {transform_indices = @transform_1, window_bounds = array<i64: 1, 2, 4>}]} {
    %c0 = arith.constant 0 : index
    %c0_0 = arith.constant 0 : index
    %0 = vector.load %arg1[%c0, %c0_0] : memref<128x4xf32, #tpu.memory_space<vmem>>, vector<128x4xf32>
    %cst = arith.constant dense<0.000000e+00> : vector<4xf32>
    %1 = vector.multi_reduction <add>, %0, %cst [0] : vector<128x4xf32> to vector<4xf32>
    %2 = vector.shape_cast %1 : vector<4xf32> to vector<1x4xf32>
    %3 = arith.mulf %0, %0 : vector<128x4xf32>
    %cst_1 = arith.constant dense<0.000000e+00> : vector<4xf32>
    %4 = vector.multi_reduction <add>, %3, %cst_1 [0] : vector<128x4xf32> to vector<4xf32>
    %5 = vector.shape_cast %4 : vector<4xf32> to vector<1x4xf32>
    %6 = tpu.concatenate %2, %5 in 0 : vector<1x4xf32>, vector<1x4xf32> -> vector<2x4xf32>
    %7 = vector.shape_cast %6 : vector<2x4xf32> to vector<1x2x4xf32>
    %c0_2 = arith.constant 0 : index
    %c0_3 = arith.constant 0 : index
    %c0_4 = arith.constant 0 : index
    %8 = vector.load %arg2[%c0_2, %c0_3, %c0_4] : memref<1x2x4xf32, #tpu.memory_space<vmem>>, vector<1x2x4xf32>
    tpu.vector_store %arg2[%c0_2, %c0_3, %c0_4], %7 {strides = array<i32>} : memref<1x2x4xf32, #tpu.memory_space<vmem>>, vector<1x2x4xf32>,
    return
  }
  func.func @transform_0(%arg0: i32) -> (i32, i32) {
    %c0_i32 = arith.constant 0 : i32
    %c0_i32_0 = arith.constant 0 : i32
    return %arg0, %c0_i32 : i32, i32
  }
  func.func @transform_1(%arg0: i32) -> (i32, i32, i32) {
    %c0_i32 = arith.constant 0 : i32
    %c0_i32_0 = arith.constant 0 : i32
    %c0_i32_1 = arith.constant 0 : i32
    return %arg0, %c0_i32, %c0_i32_0 : i32, i32, i32
  }
}

</mosaic_0001>

<bundles_post_ra>
// kernel: tpu_custom_call.1
= control target key start
LH: loop header
LB: loop body
LE: loop exit
PB: predicated region body
PF: predicated region fallthrough
CT: control target
= control target key end

     0   :  { %6 = vsyncpa [#allocation3], 0  ;;  %s566_s0 = inlined_call_operand.vmem [shape: f32[512,4], index: 0, kind: input, shape index: {}]   ;;  %s567_s1 = inlined_call_operand.hbm [shape: f32[4,2,4], index: 1, kind: output, shape index: {}]  }
   0x1   :  { %8 = vsyncpa [#allocation3 + $0x1], 0  ;;  %s424_s6 = smov 0   ;;  %s426_s7 = smov 0  }
   0x2   :  { %s428_s8 = smov 0   ;;  %s430_s9 = smov 0  }
   0x3 LB: > { %s445_s10 = sadd.s32 4294967295, %s411_s9   ;;  %s301_s11 = sadd.s32 4294967294, %s411_s9   ;;  %s411_s9 = sphi %s430_s9, %s573_s9   ;;  %s407_s8 = sphi %s428_s8, %s572_s8   ;;  %s403_s7 = sphi %s426_s7, %s571_s7   ;;  %s399_s6 = sphi %s424_s6, %s570_s6  }
   0x4   : > { %s449_s12 = sadd.s32 1, %s411_s9   ;;  %s47_s13 = sadd.s32 1, %s407_s8 }
   0x5   : > { %s44_s14 = ssub.s32 %s411_s9, %s449_s12  ;;  %p57_p0 = scmp.ne.s32.totalorder %s407_s8, %s403_s7 }
   0x6   : > { %p45_p1 = scmp.eq.s32.totalorder %s44_s14, 0  ;;  %p58_p2 = scmp.eq.s32.totalorder %s445_s10, 3 }
   0x7   : > { %p63_p3 = scmp.ne.s32.totalorder %s403_s7, %s399_s6  ;;  %p64_p4 = scmp.eq.s32.totalorder %s301_s11, 3 }
   0x8   : > { %s460_s15 = scalar_select %p45_p1, %s407_s8, %s47_s13  }
   0x9   : > { %p462_p5 = por %p58_p2, %p57_p0  ;;  %p466_p6 = por %p64_p4, %p63_p3 }
   0xa   : > { %p304_p7 = scmp.ge.s32.totalorder %s411_s9, 1  ;;  %p91_p8 = scmp.lt.s32.totalorder %s411_s9, 5 }
   0xc   : > { %p92_p9 = pnand %p304_p7, %p91_p8 }
   0xd   : > { %s306_s18 = sshll.u32 (!%p92_p9), %s445_s10, 4  ;;  %s108_s23 = sand.u32 (!%p92_p9), 1, %s403_s7  }
   0xe   : > { %95 = sbr.rel (%p92_p9) target bundleno = 83 (0x53), region = 24  ;;  %p112_p10 = scmp.lt.s32.totalorder (!%p92_p9), %s306_s18, 63 }
   0xf   : > { %s305_s24 = sshll.u32 (!%p92_p9), %s108_s23, 1  ;;  %s309_s27 = sshll.u32 (!%p92_p9), %s445_s10, 5 }
  0x10   : > { %s110_s25 = scalar_lea.vmem (!%p92_p9), [#allocation2], %s305_s24  ;;  %s240_s30 = scalar_lea.hbm (!%p92_p9), %s567_s1, %s309_s27 }
  0x11   : > { %s242_s26 = sshll.u32 (!%p92_p9), %s110_s25, 4  ;;  %s229_s2 = scalar_lea.sflag (!%p92_p9), [#allocation3], %s108_s23  ;;  %s528_s26 = int_to_ptr.vmem [resolvable:$true] %s242_s26 }
  0x12   : > { %s351_s3 = scalar_lea.vmem (!%p92_p9), %s528_s26, 32  ;;  %s413_s4 = smov (!%p92_p9), [#allocation2]  }
  0x13   : > { %s575_s18 = smov (!%p112_p10, %s306_s18), 63  ;;  %vm133_vm0 = vcmask 31744   ;;  %vm224_vm1 = vcmask 1040384   ;;  %vm226_vm2 = vcmask 25600   ;;  %p352_p11 = scmp.ne.s32.totalorder %s528_s26, %s351_s3 }
  0x14   : > { %s307_s19 = sshll.u32 %s575_s18, 3  ;;  %s355_s5 = sshll.u32 %s413_s4, 4  ;;  %s356_s5 = int_to_ptr.vmem [resolvable:$false] %s355_s5 }
  0x15   : > { %s476_s22 = scalar_lea.vmem %s566_s0, %s307_s19  ;;  %p353_p12 = pnand %p352_p11, %p462_p5 }
  0x16   : > { %v117_v0 = vld [vmem:[%s476_s22] sm:$0xff]  ;;  %v118_v1 = vld [vmem:[%s476_s22 + $0x8] sm:$0xff]  ;;  %v119_v2 = vld [vmem:[%s476_s22 + $0x10] sm:$0xff]  ;;  %s357_s10 = scalar_lea.vmem %s356_s5, 64  ;;  %p358_p0 = scmp.lt.s32.totalorder %s528_s26, %s356_s5 }
  0x17   : > { %v134_v3 = vsel %vm133_vm0, %v117_v0, 0.0  ;;  %v135_v4 = vsel %vm133_vm0, %v118_v1, 0.0  ;;  %v137_v5 = vsel %vm133_vm0, %v119_v2, 0.0  ;;  %v120_v6 = vld [vmem:[%s476_s22 + $0x18] sm:$0xff]  ;;  %v121_v9 = vld [vmem:[%s476_s22 + $0x20] sm:$0xff]  ;;  %v122_v12 = vld [vmem:[%s476_s22 + $0x28] sm:$0xff]  ;;  %v171_v14 = vmul.f32 %v117_v0, %v117_v0  ;;  %p354_p13 = pneg %p353_p12  ;;  %p359_p1 = scmp.lt.s32.totalorder %s357_s10, %s351_s3 }
  0x18   : > { %v136_v7 = vadd.f32 %v135_v4, %v134_v3  ;;  %v139_v8 = vsel %vm133_vm0, %v120_v6, 0.0  ;;  %v141_v11 = vsel %vm133_vm0, %v121_v9, 0.0  ;;  %v172_v15 = vmul.f32 %v118_v1, %v118_v1  ;;  %v123_v18 = vld [vmem:[%s476_s22 + $0x30] sm:$0xff]  ;;  %v124_v23 = vld [vmem:[%s476_s22 + $0x38] sm:$0xff]  ;;  %v125_v30 = vld [vmem:[%s476_s22 + $0x40] sm:$0xff] }
  0x19   : > { %v173_v16 = vmul.f32 %v119_v2, %v119_v2  ;;  %v143_v17 = vsel %vm133_vm0, %v122_v12, 0.0  ;;  %v174_v20 = vmul.f32 %v120_v6, %v120_v6  ;;  %v145_v21 = vsel %vm133_vm0, %v123_v18, 0.0  ;;  %v126_v36 = vld [vmem:[%s476_s22 + $0x48] sm:$0xff]  ;;  %v127_v42 = vld [vmem:[%s476_s22 + $0x50] sm:$0xff]  ;;  %v128_v48 = vld [vmem:[%s476_s22 + $0x58] sm:$0xff]  ;;  %p360_p2 = por %p359_p1, %p358_p0 }
  0x1a   : > { %v138_v10 = vadd.f32 %v137_v5, %v136_v7  ;;  %v175_v22 = vmul.f32 %v121_v9, %v121_v9  ;;  %v187_v25 = vsel %vm133_vm0, %v171_v14, 0.0  ;;  %v188_v26 = vsel %vm133_vm0, %v172_v15, 0.0  ;;  %v129_v54 = vld [vmem:[%s476_s22 + $0x60] sm:$0xff]  ;;  %v130_v60 = vld [vmem:[%s476_s22 + $0x68] sm:$0xff]  ;;  %v131_v2 = vld [vmem:[%s476_s22 + $0x70] sm:$0xff] }
  0x1b   : > { %v190_v27 = vsel %vm133_vm0, %v173_v16, 0.0  ;;  %v147_v28 = vsel %vm133_vm0, %v124_v23, 0.0  ;;  %v189_v29 = vadd.f32 %v188_v26, %v187_v25  ;;  %v176_v32 = vmul.f32 %v122_v12, %v122_v12  ;;  %p361_p3 = pnand %p360_p2, %p354_p13 }
  0x1c   : > { %v140_v13 = vadd.f32 %v139_v8, %v138_v10  ;;  %v192_v33 = vsel %vm133_vm0, %v174_v20, 0.0  ;;  %v149_v34 = vsel %vm133_vm0, %v125_v30, 0.0  ;;  %v177_v38 = vmul.f32 %v123_v18, %v123_v18  ;;  %v132_v8 = vld [vmem:[%s476_s22 + $0x78] sm:$0xff] }
  0x1d   : > { %v191_v35 = vadd.f32 %v190_v27, %v189_v29  ;;  %v194_v39 = vsel %vm133_vm0, %v175_v22, 0.0  ;;  %v151_v40 = vsel %vm133_vm0, %v126_v36, 0.0  ;;  %v178_v44 = vmul.f32 %v124_v23, %v124_v23 }
  0x1e   : > { %v142_v19 = vadd.f32 %v141_v11, %v140_v13  ;;  %v196_v45 = vsel %vm133_vm0, %v176_v32, 0.0  ;;  %v153_v46 = vsel %vm133_vm0, %v127_v42, 0.0  ;;  %v179_v50 = vmul.f32 %v125_v30, %v125_v30 }
  0x1f   : > { %v193_v41 = vadd.f32 %v192_v33, %v191_v35  ;;  %v198_v51 = vsel %vm133_vm0, %v177_v38, 0.0  ;;  %v155_v52 = vsel %vm133_vm0, %v128_v48, 0.0  ;;  %v180_v56 = vmul.f32 %v126_v36, %v126_v36 }
  0x20   : > { %v144_v24 = vadd.f32 %v143_v17, %v142_v19  ;;  %v200_v57 = vsel %vm133_vm0, %v178_v44, 0.0  ;;  %v157_v58 = vsel %vm133_vm0, %v129_v54, 0.0  ;;  %v181_v62 = vmul.f32 %v127_v42, %v127_v42 }
  0x21   : > { %v195_v47 = vadd.f32 %v194_v39, %v193_v41  ;;  %v202_v63 = vsel %vm133_vm0, %v179_v50, 0.0  ;;  %v159_v0 = vsel %vm133_vm0, %v130_v60, 0.0  ;;  %v182_v4 = vmul.f32 %v128_v48, %v128_v48 }
  0x22   : > { %v146_v31 = vadd.f32 %v145_v21, %v144_v24  ;;  %v204_v5 = vsel %vm133_vm0, %v180_v56, 0.0  ;;  %v161_v6 = vsel %vm133_vm0, %v131_v2, 0.0  ;;  %v183_v10 = vmul.f32 %v129_v54, %v129_v54 }
  0x23   : > { %v197_v53 = vadd.f32 %v196_v45, %v195_v47  ;;  %v206_v11 = vsel %vm133_vm0, %v181_v62, 0.0  ;;  %v163_v12 = vsel %vm133_vm0, %v132_v8, 0.0  ;;  %v184_v15 = vmul.f32 %v130_v60, %v130_v60 }
  0x24   : > { %v148_v37 = vadd.f32 %v147_v28, %v146_v31  ;;  %v208_v16 = vsel %vm133_vm0, %v182_v4, 0.0  ;;  %v185_v19 = vmul.f32 %v131_v2, %v131_v2  ;;  %v210_v20 = vsel %vm133_vm0, %v183_v10, 0.0 }
  0x25   : > { %v199_v59 = vadd.f32 %v198_v51, %v197_v53  ;;  %v186_v23 = vmul.f32 %v132_v8, %v132_v8  ;;  %v212_v24 = vsel %vm133_vm0, %v184_v15, 0.0 }
  0x26   : > { %v150_v43 = vadd.f32 %v149_v34, %v148_v37  ;;  %v214_v27 = vsel %vm133_vm0, %v185_v19, 0.0 }
  0x27   : > { %v201_v1 = vadd.f32 %v200_v57, %v199_v59  ;;  %v216_v29 = vsel %vm133_vm0, %v186_v23, 0.0 }
  0x28   : > { %v152_v49 = vadd.f32 %v151_v40, %v150_v43 }
  0x29   : > { %v203_v7 = vadd.f32 %v202_v63, %v201_v1 }
  0x2a   : > { %v154_v55 = vadd.f32 %v153_v46, %v152_v49 }
  0x2b   : > { %v205_v13 = vadd.f32 %v204_v5, %v203_v7 }
  0x2c   : > { %v156_v61 = vadd.f32 %v155_v52, %v154_v55 }
  0x2d   : > { %v207_v17 = vadd.f32 %v206_v11, %v205_v13 }
  0x2e   : > { %v158_v3 = vadd.f32 %v157_v58, %v156_v61 }
  0x2f   : > { %v209_v21 = vadd.f32 %v208_v16, %v207_v17 }
  0x30   : > { %v160_v9 = vadd.f32 %v159_v0, %v158_v3 }
  0x31   : > { %v211_v25 = vadd.f32 %v210_v20, %v209_v21 }
  0x32   : > { %v162_v14 = vadd.f32 %v161_v6, %v160_v9 }
  0x33   : > { %v213_v28 = vadd.f32 %v212_v24, %v211_v25 }
  0x34   : > { %v164_v18 = vadd.f32 %v163_v12, %v162_v14 }
  0x35   : > { %v215_v31 = vadd.f32 %v214_v27, %v213_v28 }
  0x36   : > { %v165_v22 = vrot.slane %v164_v18, 4 }
  0x37   : > { %v217_v32 = vadd.f32 %v216_v29, %v215_v31 }
  0x38   : > { %v166_v26 = vadd.f32 %v165_v22, %v164_v18 }
  0x39   : > { %v218_v34 = vrot.slane %v217_v32, 4 }
  0x3a   : > { %v167_v30 = vrot.slane %v166_v26, 2 }
  0x3b   : > { %v219_v35 = vadd.f32 %v218_v34, %v217_v32 }
  0x3c   : > { %v168_v33 = vadd.f32 %v167_v30, %v166_v26 }
  0x3d   : > { %v220_v37 = vrot.slane %v219_v35, 2 }
  0x3e   : > { %v169_v36 = vrot.slane %v168_v33, 1 }
  0x3f   : > { %v221_v38 = vadd.f32 %v220_v37, %v219_v35 }
  0x40   : > { %v170_v39 = vadd.f32 %v169_v36, %v168_v33 }
  0x41   : > { %v222_v40 = vrot.slane %v221_v38, 1 }
  0x43   : > { %v223_v41 = vadd.f32 %v222_v40, %v221_v38 }
  0x45   : > { %v225_v42 = vsel %vm224_vm1, %v170_v39, %v223_v41 }
  0x46   : > { %227 = vst.msk [vmem:[%s110_s25] sm:$0x3] %vm226_vm2, %v225_v42 }
  0x47   : > { %364 = shalt.err (!%p361_p3)
}
  0x48   : > { %s365_s11 = scalar_lea.hbm %s240_s30, 32  ;;  %s369_s18 = scalar_lea.hbm %s567_s1, 128 }
  0x49   : > { %p366_p4 = scmp.ne.s32.totalorder %s240_s30, %s365_s11  ;;  %p370_p9 = scmp.lt.s32.totalorder %s240_s30, %s567_s1 }
  0x4a   : > { %p371_p10 = scmp.lt.s32.totalorder %s369_s18, %s365_s11 }
  0x4b   : > { %p367_p7 = pnand %p366_p4, %p462_p5 }
  0x4c   : > { %p372_p11 = por %p371_p10, %p370_p9 }
  0x4d   : > { %p368_p8 = pneg %p367_p7 }
  0x4f   : > { %p373_p12 = pnand %p372_p11, %p368_p8 }
  0x51   : > { %376 = shalt.err (!%p373_p12)
}
  0x52   : > { %312 = dma.vmem_to_hbm [thread:$0]  (%p462_p5), %s528_s26, 32, %s240_s30, %s229_s2  }
  0x53 PF: > { %p318_p13 = scmp.ge.s32.totalorder %s411_s9, 2  ;;  %s254_s21 = sand.u32 1, %s399_s6  }
  0x54   : > { %s255_s22 = scalar_lea.sflag [#allocation3], %s254_s21 }
  0x55   : > { %p315_p0 = pnand %p318_p13, %p466_p6 }
  0x57   : > { %p316_p1 = pneg %p315_p0 }
  0x59   : > { %394 = dma.done.wait (%p316_p1), %s255_s22, 32  }
  0x5a   : > { %396 = vsyncadd (%p316_p1), %s255_s22, 4294967264  ;;  %p11_p2 = scmp.ge.s32.totalorder %s449_s12, 6   ;;  %s570_s6 = smov %s403_s7 }
  0x5b   : > { %s571_s7 = smov %s407_s8  ;;  %s572_s8 = smov %s460_s15 }
  0x5c   : > { %s573_s9 = smov %s449_s12  ;;  %13 = sbr.rel (!%p11_p2) target bundleno = 3 (0x3), region = 59 }
  0x61   :  { %260 = vsyncpa [#allocation3], 1 }
  0x62   :  { %262 = vsyncpa [#allocation3 + $0x1], 1 }

</bundles_post_ra>
